<compile_context>
chip_gen: v5e
topology: v5e:2x2
jax: 0.10.0
libtpu: 0.0.40
codegen_flags: <defaults>
</compile_context>

<pallas_src>
import math
import functools

import jax
import jax.numpy as jnp
from jax import lax
from jax.experimental import pallas as pl
from jax.experimental.pallas import tpu as pltpu

EMB_DIM = 128
LANE = 128                      # output-feature padding granularity
V_CHUNK = 512                   # in-kernel one-hot / matmul chunk over vocab
RESIDENT_TABLE_BYTES = 4 * 1024 * 1024   # keep table VMEM-resident below this
GATHER_TB = 8                   # batch tile for the HBM row-gather path


def _round_up(n, m):
    return ((n + m - 1) // m) * m


# ----------------------------------------------------------------------------
# shared epilogue: mean -> relu -> linear -> lane-dense store
# ----------------------------------------------------------------------------
def _epilogue(x, emb_sum, bias_ref, wt_ref, bout_ref, o_ref, pad_idx):
    # #non-padding tokens per row, (TB, 1); cheap per-row reciprocal.
    sizes = jnp.sum((x != pad_idx).astype(jnp.float32), axis=1, keepdims=True)
    inv = 1.0 / sizes
    query = jnp.maximum(emb_sum * inv + bias_ref[...], 0.0)
    logits = jnp.dot(query.astype(wt_ref.dtype), wt_ref[...],
                     preferred_element_type=jnp.float32)
    o_ref[...] = logits + bout_ref[...]


# ----------------------------------------------------------------------------
# Path 1: VMEM-resident table (small / medium vocab), grid only over B tiles
# ----------------------------------------------------------------------------
def net_resident_kernel(x_ref, emb_ref, bias_ref, wt_ref, bout_ref, o_ref, *,
                        pad_idx, v_chunk):
    tb, L = x_ref.shape
    v_pad, D = emb_ref.shape
    x = x_ref[...]                                     # (TB, L) int32 ids

    # Hoisted iota; per chunk the base is subtracted from the (TB,1) token
    # column (cheap) instead of added to the (TB, v_chunk) iota.
    col = lax.broadcasted_iota(jnp.int32, (tb, v_chunk), 1)

    emb_sum = jnp.zeros((tb, D), jnp.float32)
    for c in range(v_pad // v_chunk):                  # static, unrolled
        base = c * v_chunk
        # One-hot counts for this vocab chunk, accumulated directly in the
        # MXU dtype (exact: counts <= L).
        counts = jnp.zeros((tb, v_chunk), emb_ref.dtype)
        for l in range(L):                             # L small & static
            counts = counts + (col == (x[:, l:l + 1] - base)).astype(emb_ref.dtype)
        # Embedding-bag partial sum via MXU; padding row of the table is zero,
        # so pad tokens drop out exactly.
        emb_sum = emb_sum + jnp.dot(counts, emb_ref[pl.ds(base, v_chunk), :],
                                    preferred_element_type=jnp.float32)

    _epilogue(x, emb_sum, bias_ref, wt_ref, bout_ref, o_ref, pad_idx)


def _forward_resident(x, emb_pad, bias2d, wt_pad, bout_pad, pad_idx, n_out):
    B, L = x.shape
    v_pad, D = emb_pad.shape
    n_pad = wt_pad.shape[1]

    # Batch tile: >= 8 sublanes; once B >= 16 make sure there are >= 2 tiles so
    # the "parallel" axis feeds both TensorCores on v7x.
    b8 = _round_up(B, 8)
    tb = min(64, _round_up(b8 // 2, 8)) if B >= 16 else b8
    b_pad = _round_up(B, tb)
    # Pad batch rows with token 0 (valid id) so padded rows never divide by 0.
    x_pad = jnp.pad(x.astype(jnp.int32), ((0, b_pad - B), (0, 0)))

    kern = functools.partial(net_resident_kernel, pad_idx=pad_idx,
                             v_chunk=min(V_CHUNK, v_pad))
    out = pl.pallas_call(
        kern,
        out_shape=jax.ShapeDtypeStruct((b_pad, n_pad), jnp.float32),
        grid_spec=pltpu.PrefetchScalarGridSpec(
            num_scalar_prefetch=0,
            grid=(b_pad // tb,),
            in_specs=[
                pl.BlockSpec((tb, L), lambda i: (i, 0)),       # token ids
                pl.BlockSpec((v_pad, D), lambda i: (0, 0)),    # full table (resident)
                pl.BlockSpec((1, D), lambda i: (0, 0)),        # bias
                pl.BlockSpec((D, n_pad), lambda i: (0, 0)),    # W^T padded
                pl.BlockSpec((1, n_pad), lambda i: (0, 0)),    # out bias
            ],
            out_specs=pl.BlockSpec((tb, n_pad), lambda i: (i, 0)),
        ),
        compiler_params=pltpu.CompilerParams(
            dimension_semantics=("parallel",),
            vmem_limit_bytes=32 * 1024 * 1024,
        ),
    )(x_pad, emb_pad, bias2d, wt_pad, bout_pad)
    return out[:B, :n_out]


# ----------------------------------------------------------------------------
# Path 2: large vocab -> table stays in HBM, per-row DMA gather
# ----------------------------------------------------------------------------
def net_gather_kernel(ids_ref,                  # SMEM scalar prefetch (b_pad*L,)
                      x_ref, bias_ref, wt_ref, bout_ref,   # VMEM blocks
                      emb_hbm,                  # full table in HBM (pl.ANY)
                      o_ref, rows_buf, sems, *, pad_idx, tb, L):
    i = pl.program_id(0)
    base = i * (tb * L)

    # Issue all B*L row gathers for this tile (all in flight concurrently),
    # then wait, then reduce.  HBM traffic: tb*L*D elements instead of V*D.
    copies = []
    for l in range(L):
        for b in range(tb):
            tok = ids_ref[base + b * L + l]
            cp = pltpu.make_async_copy(
                emb_hbm.at[pl.ds(tok, 1)],              # (1, D) row
                rows_buf.at[pl.ds(l * tb + b, 1)],      # (1, D) slot
                sems.at[l * tb + b])
            cp.start()
            copies.append(cp)
    for cp in copies:
        cp.wait()

    D = rows_buf.shape[-1]
    emb_sum = jnp.zeros((tb, D), jnp.float32)
    for l in range(L):
        emb_sum = emb_sum + rows_buf[pl.ds(l * tb, tb), :].astype(jnp.float32)

    _epilogue(x_ref[...], emb_sum, bias_ref, wt_ref, bout_ref, o_ref, pad_idx)


def _forward_gather(x, emb_pad, bias2d, wt_pad, bout_pad, pad_idx, n_out):
    B, L = x.shape
    v_pad, D = emb_pad.shape
    n_pad = wt_pad.shape[1]

    tb = GATHER_TB
    b_pad = _round_up(B, tb)
    x_pad = jnp.pad(x.astype(jnp.int32), ((0, b_pad - B), (0, 0)))
    ids_flat = x_pad.reshape(-1)                    # scalar-prefetched ids

    kern = functools.partial(net_gather_kernel, pad_idx=pad_idx, tb=tb, L=L)
    out = pl.pallas_call(
        kern,
        out_shape=jax.ShapeDtypeStruct((b_pad, n_pad), jnp.float32),
        grid_spec=pltpu.PrefetchScalarGridSpec(
            num_scalar_prefetch=1,
            grid=(b_pad // tb,),
            in_specs=[
                pl.BlockSpec((tb, L), lambda i, ids: (i, 0)),     # token ids (VMEM)
                pl.BlockSpec((1, D), lambda i, ids: (0, 0)),      # bias
                pl.BlockSpec((D, n_pad), lambda i, ids: (0, 0)),  # W^T padded
                pl.BlockSpec((1, n_pad), lambda i, ids: (0, 0)),  # out bias
                pl.BlockSpec(memory_space=pl.ANY),                # table in HBM
            ],
            out_specs=pl.BlockSpec((tb, n_pad), lambda i, ids: (i, 0)),
            scratch_shapes=[
                pltpu.VMEM((tb * L, D), emb_pad.dtype),           # gathered rows
                pltpu.SemaphoreType.DMA((tb * L,)),
            ],
        ),
        compiler_params=pltpu.CompilerParams(
            dimension_semantics=("parallel",),
            vmem_limit_bytes=16 * 1024 * 1024,
        ),
    )(ids_flat, x_pad, bias2d, wt_pad, bout_pad, emb_pad)
    return out[:B, :n_out]


# ----------------------------------------------------------------------------
# Params / wrapper
# ----------------------------------------------------------------------------
def make_params(key, IN, OUT):
    k1, k2, k3, k4 = jax.random.split(key, 4)
    V = IN + 1
    # nn.Embedding default init: N(0, 1); padding row zeroed.
    emb = jax.random.normal(k1, (V, EMB_DIM), jnp.float32)
    emb = emb.at[IN].set(0.0)
    stdv = 1.0 / math.sqrt(IN)
    bias = jax.random.uniform(k2, (EMB_DIM,), jnp.float32, -stdv, stdv)
    bound = 1.0 / math.sqrt(EMB_DIM)
    w = jax.random.uniform(k3, (OUT + 1, EMB_DIM), jnp.float32, -bound, bound)
    b = jax.random.uniform(k4, (OUT + 1,), jnp.float32, -bound, bound)
    return emb, bias, w, b


def prepare_params(emb, bias, w, b, param_dtype=jnp.bfloat16):
    """One-time layout prep (NOT on the per-call path): pad + cast the table,
    pre-transpose + pad the smax weight to lane-dense (D, N_pad)."""
    V, D = emb.shape
    v_pad = _round_up(V, V_CHUNK)
    emb_pad = jnp.zeros((v_pad, D), param_dtype).at[:V].set(emb.astype(param_dtype))

    n = w.shape[0]                        # OUT + 1
    n_pad = _round_up(n, LANE)
    wt_pad = jnp.zeros((D, n_pad), param_dtype).at[:, :n].set(w.T.astype(param_dtype))
    bias2d = bias[None, :].astype(jnp.float32)
    bout_pad = jnp.zeros((1, n_pad), jnp.float32).at[0, :n].set(b.astype(jnp.float32))
    return emb_pad, bias2d, wt_pad, bout_pad


def net_forward(x, emb_pad, bias2d, wt_pad, bout_pad, pad_idx, n_out, *,
                use_gather=None):
    table_bytes = emb_pad.shape[0] * emb_pad.shape[1] * emb_pad.dtype.itemsize
    if use_gather is None:
        use_gather = table_bytes > RESIDENT_TABLE_BYTES
    fwd = _forward_gather if use_gather else _forward_resident
    return fwd(x, emb_pad, bias2d, wt_pad, bout_pad, pad_idx, n_out)


def net_forward_ref(x, emb, bias, w, b, IN):
    # Pure-JAX reference mirroring the PyTorch forward.
    gathered = emb[x]                                   # (B, L, 128)
    emb_sum = jnp.sum(gathered, axis=1)                 # (B, 128)
    sizes = jnp.sum(x != IN, axis=1, keepdims=True).astype(jnp.float32)
    query = jax.nn.relu(emb_sum / sizes + bias[None, :])
    return query @ w.T + b[None, :]


if __name__ == "__main__":
    IN, OUT = 1000, 16        # V = 1001 -> padded to 1024 (2 in-kernel chunks)
    B, L = 4, 8

    key = jax.random.PRNGKey(0)
    kp, kx = jax.random.split(key)
    emb, bias, w, b = make_params(kp, IN, OUT)

    # Token ids in [0, IN); mark the last two positions of every other row as
    # padding (= IN) so the mean over non-padding tokens is exercised.
    x = jax.random.randint(kx, (B, L), 0, IN, dtype=jnp.int32)
    pad_mask = jnp.zeros((B, L), dtype=bool).at[::2, L - 2:].set(True)
    x = jnp.where(pad_mask, IN, x)

    ref = net_forward_ref(x, emb, bias, w, b, IN)

    # 1) f32 params, VMEM-resident table path (tight check).
    p32 = prepare_params(emb, bias, w, b, jnp.float32)
    out32 = jax.block_until_ready(net_forward(x, *p32, IN, OUT + 1))
    assert out32.shape == (B, OUT + 1)
    assert jnp.allclose(out32, ref, atol=1e-4, rtol=1e-4), "f32 resident mismatch"

    # 2) bf16 params (default), VMEM-resident table path (bf16 MXU, half HBM).
    pbf = prepare_params(emb, bias, w, b)
    outbf = jax.block_until_ready(net_forward(x, *pbf, IN, OUT + 1))
    assert jnp.allclose(outbf, ref, atol=2e-2, rtol=2e-2), "bf16 resident mismatch"

    # 3) bf16 params, forced large-V path: table in HBM + DMA row gather.
    outg = jax.block_until_ready(
        net_forward(x, *pbf, IN, OUT + 1, use_gather=True))
    assert jnp.allclose(outg, ref, atol=2e-2, rtol=2e-2), "gather path mismatch"

    print("KERNEL_OK")
</pallas_src>

<mosaic_0001>
module attributes {stable_mosaic.version = 11 : i64} {
  func.func @net_resident_kernel(%arg0: i32, %arg1: memref<8x8xi32, #tpu.memory_space<vmem>>, %arg2: memref<1024x128xf32, #tpu.memory_space<vmem>>, %arg3: memref<1x128xf32, #tpu.memory_space<vmem>>, %arg4: memref<128x128xf32, #tpu.memory_space<vmem>>, %arg5: memref<1x128xf32, #tpu.memory_space<vmem>>, %arg6: memref<8x128xf32, #tpu.memory_space<vmem>>) attributes {dimension_semantics = [#tpu.dimension_semantics<parallel>], iteration_bounds = array<i64: 1>, scalar_prefetch = 0 : i64, scratch_operands = 0 : i64, tpu.core_type = #tpu.core_type<tc>, window_params = [{transform_indices = @transform_0, window_bounds = array<i64: 8, 8>}, {pipeline_mode = #tpu.pipeline_mode<synchronous>, transform_indices = @transform_1, window_bounds = array<i64: 1024, 128>}, {pipeline_mode = #tpu.pipeline_mode<synchronous>, transform_indices = @transform_2, window_bounds = array<i64: 1, 128>}, {pipeline_mode = #tpu.pipeline_mode<synchronous>, transform_indices = @transform_3, window_bounds = array<i64: 128, 128>}, {pipeline_mode = #tpu.pipeline_mode<synchronous>, transform_indices = @transform_4, window_bounds = array<i64: 1, 128>}, {transform_indices = @transform_5, window_bounds = array<i64: 8, 128>}]} {
    %c0 = arith.constant 0 : index
    %c0_0 = arith.constant 0 : index
    %0 = vector.load %arg1[%c0, %c0_0] : memref<8x8xi32, #tpu.memory_space<vmem>>, vector<8x8xi32>
    %1 = tpu.iota {dimensions = array<i32: 1>} : vector<8x512xi32>
    %cst = arith.constant 0.000000e+00 : f32
    %2 = vector.broadcast %cst : f32 to vector<8x128xf32>
    %cst_1 = arith.constant 0.000000e+00 : f32
    %3 = vector.broadcast %cst_1 : f32 to vector<8x512xf32>
    %4 = vector.extract_strided_slice %0 {offsets = [0, 0], sizes = [8, 1], strides = [1, 1]} : vector<8x8xi32> to vector<8x1xi32>
    %c0_i32 = arith.constant 0 : i32
    %5 = vector.broadcast %c0_i32 : i32 to vector<8x1xi32>
    %6 = arith.subi %4, %5 : vector<8x1xi32>
    %7 = vector.broadcast %6 : vector<8x1xi32> to vector<8x512xi32>
    %8 = arith.cmpi eq, %1, %7 : vector<8x512xi32>
    %9 = arith.extui %8 : vector<8x512xi1> to vector<8x512xi32>
    %10 = arith.sitofp %9 : vector<8x512xi32> to vector<8x512xf32>
    %11 = arith.addf %3, %10 : vector<8x512xf32>
    %12 = vector.extract_strided_slice %0 {offsets = [0, 1], sizes = [8, 1], strides = [1, 1]} : vector<8x8xi32> to vector<8x1xi32>
    %c0_i32_2 = arith.constant 0 : i32
    %13 = vector.broadcast %c0_i32_2 : i32 to vector<8x1xi32>
    %14 = arith.subi %12, %13 : vector<8x1xi32>
    %15 = vector.broadcast %14 : vector<8x1xi32> to vector<8x512xi32>
    %16 = arith.cmpi eq, %1, %15 : vector<8x512xi32>
    %17 = arith.extui %16 : vector<8x512xi1> to vector<8x512xi32>
    %18 = arith.sitofp %17 : vector<8x512xi32> to vector<8x512xf32>
    %19 = arith.addf %11, %18 : vector<8x512xf32>
    %20 = vector.extract_strided_slice %0 {offsets = [0, 2], sizes = [8, 1], strides = [1, 1]} : vector<8x8xi32> to vector<8x1xi32>
    %c0_i32_3 = arith.constant 0 : i32
    %21 = vector.broadcast %c0_i32_3 : i32 to vector<8x1xi32>
    %22 = arith.subi %20, %21 : vector<8x1xi32>
    %23 = vector.broadcast %22 : vector<8x1xi32> to vector<8x512xi32>
    %24 = arith.cmpi eq, %1, %23 : vector<8x512xi32>
    %25 = arith.extui %24 : vector<8x512xi1> to vector<8x512xi32>
    %26 = arith.sitofp %25 : vector<8x512xi32> to vector<8x512xf32>
    %27 = arith.addf %19, %26 : vector<8x512xf32>
    %28 = vector.extract_strided_slice %0 {offsets = [0, 3], sizes = [8, 1], strides = [1, 1]} : vector<8x8xi32> to vector<8x1xi32>
    %c0_i32_4 = arith.constant 0 : i32
    %29 = vector.broadcast %c0_i32_4 : i32 to vector<8x1xi32>
    %30 = arith.subi %28, %29 : vector<8x1xi32>
    %31 = vector.broadcast %30 : vector<8x1xi32> to vector<8x512xi32>
    %32 = arith.cmpi eq, %1, %31 : vector<8x512xi32>
    %33 = arith.extui %32 : vector<8x512xi1> to vector<8x512xi32>
    %34 = arith.sitofp %33 : vector<8x512xi32> to vector<8x512xf32>
    %35 = arith.addf %27, %34 : vector<8x512xf32>
    %36 = vector.extract_strided_slice %0 {offsets = [0, 4], sizes = [8, 1], strides = [1, 1]} : vector<8x8xi32> to vector<8x1xi32>
    %c0_i32_5 = arith.constant 0 : i32
    %37 = vector.broadcast %c0_i32_5 : i32 to vector<8x1xi32>
    %38 = arith.subi %36, %37 : vector<8x1xi32>
    %39 = vector.broadcast %38 : vector<8x1xi32> to vector<8x512xi32>
    %40 = arith.cmpi eq, %1, %39 : vector<8x512xi32>
    %41 = arith.extui %40 : vector<8x512xi1> to vector<8x512xi32>
    %42 = arith.sitofp %41 : vector<8x512xi32> to vector<8x512xf32>
    %43 = arith.addf %35, %42 : vector<8x512xf32>
    %44 = vector.extract_strided_slice %0 {offsets = [0, 5], sizes = [8, 1], strides = [1, 1]} : vector<8x8xi32> to vector<8x1xi32>
    %c0_i32_6 = arith.constant 0 : i32
    %45 = vector.broadcast %c0_i32_6 : i32 to vector<8x1xi32>
    %46 = arith.subi %44, %45 : vector<8x1xi32>
    %47 = vector.broadcast %46 : vector<8x1xi32> to vector<8x512xi32>
    %48 = arith.cmpi eq, %1, %47 : vector<8x512xi32>
    %49 = arith.extui %48 : vector<8x512xi1> to vector<8x512xi32>
    %50 = arith.sitofp %49 : vector<8x512xi32> to vector<8x512xf32>
    %51 = arith.addf %43, %50 : vector<8x512xf32>
    %52 = vector.extract_strided_slice %0 {offsets = [0, 6], sizes = [8, 1], strides = [1, 1]} : vector<8x8xi32> to vector<8x1xi32>
    %c0_i32_7 = arith.constant 0 : i32
    %53 = vector.broadcast %c0_i32_7 : i32 to vector<8x1xi32>
    %54 = arith.subi %52, %53 : vector<8x1xi32>
    %55 = vector.broadcast %54 : vector<8x1xi32> to vector<8x512xi32>
    %56 = arith.cmpi eq, %1, %55 : vector<8x512xi32>
    %57 = arith.extui %56 : vector<8x512xi1> to vector<8x512xi32>
    %58 = arith.sitofp %57 : vector<8x512xi32> to vector<8x512xf32>
    %59 = arith.addf %51, %58 : vector<8x512xf32>
    %60 = vector.extract_strided_slice %0 {offsets = [0, 7], sizes = [8, 1], strides = [1, 1]} : vector<8x8xi32> to vector<8x1xi32>
    %c0_i32_8 = arith.constant 0 : i32
    %61 = vector.broadcast %c0_i32_8 : i32 to vector<8x1xi32>
    %62 = arith.subi %60, %61 : vector<8x1xi32>
    %63 = vector.broadcast %62 : vector<8x1xi32> to vector<8x512xi32>
    %64 = arith.cmpi eq, %1, %63 : vector<8x512xi32>
    %65 = arith.extui %64 : vector<8x512xi1> to vector<8x512xi32>
    %66 = arith.sitofp %65 : vector<8x512xi32> to vector<8x512xf32>
    %67 = arith.addf %59, %66 : vector<8x512xf32>
    %c0_9 = arith.constant 0 : index
    %c0_10 = arith.constant 0 : index
    %68 = vector.load %arg2[%c0_9, %c0_10] : memref<1024x128xf32, #tpu.memory_space<vmem>>, vector<512x128xf32>
    %cst_11 = arith.constant dense<0.000000e+00> : vector<8x128xf32>
    %69 = tpu.matmul %67, %68, %cst_11 {dimension_numbers = #tpu.dot_dimension_numbers<[1], [0], [0], [1], [0, 0, 1, 1], [], []>} : vector<8x512xf32>, vector<512x128xf32>, vector<8x128xf32> -> vector<8x128xf32>
    %70 = arith.addf %2, %69 : vector<8x128xf32>
    %cst_12 = arith.constant 0.000000e+00 : f32
    %71 = vector.broadcast %cst_12 : f32 to vector<8x512xf32>
    %72 = vector.extract_strided_slice %0 {offsets = [0, 0], sizes = [8, 1], strides = [1, 1]} : vector<8x8xi32> to vector<8x1xi32>
    %c512_i32 = arith.constant 512 : i32
    %73 = vector.broadcast %c512_i32 : i32 to vector<8x1xi32>
    %74 = arith.subi %72, %73 : vector<8x1xi32>
    %75 = vector.broadcast %74 : vector<8x1xi32> to vector<8x512xi32>
    %76 = arith.cmpi eq, %1, %75 : vector<8x512xi32>
    %77 = arith.extui %76 : vector<8x512xi1> to vector<8x512xi32>
    %78 = arith.sitofp %77 : vector<8x512xi32> to vector<8x512xf32>
    %79 = arith.addf %71, %78 : vector<8x512xf32>
    %80 = vector.extract_strided_slice %0 {offsets = [0, 1], sizes = [8, 1], strides = [1, 1]} : vector<8x8xi32> to vector<8x1xi32>
    %c512_i32_13 = arith.constant 512 : i32
    %81 = vector.broadcast %c512_i32_13 : i32 to vector<8x1xi32>
    %82 = arith.subi %80, %81 : vector<8x1xi32>
    %83 = vector.broadcast %82 : vector<8x1xi32> to vector<8x512xi32>
    %84 = arith.cmpi eq, %1, %83 : vector<8x512xi32>
    %85 = arith.extui %84 : vector<8x512xi1> to vector<8x512xi32>
    %86 = arith.sitofp %85 : vector<8x512xi32> to vector<8x512xf32>
    %87 = arith.addf %79, %86 : vector<8x512xf32>
    %88 = vector.extract_strided_slice %0 {offsets = [0, 2], sizes = [8, 1], strides = [1, 1]} : vector<8x8xi32> to vector<8x1xi32>
    %c512_i32_14 = arith.constant 512 : i32
    %89 = vector.broadcast %c512_i32_14 : i32 to vector<8x1xi32>
    %90 = arith.subi %88, %89 : vector<8x1xi32>
    %91 = vector.broadcast %90 : vector<8x1xi32> to vector<8x512xi32>
    %92 = arith.cmpi eq, %1, %91 : vector<8x512xi32>
    %93 = arith.extui %92 : vector<8x512xi1> to vector<8x512xi32>
    %94 = arith.sitofp %93 : vector<8x512xi32> to vector<8x512xf32>
    %95 = arith.addf %87, %94 : vector<8x512xf32>
    %96 = vector.extract_strided_slice %0 {offsets = [0, 3], sizes = [8, 1], strides = [1, 1]} : vector<8x8xi32> to vector<8x1xi32>
    %c512_i32_15 = arith.constant 512 : i32
    %97 = vector.broadcast %c512_i32_15 : i32 to vector<8x1xi32>
    %98 = arith.subi %96, %97 : vector<8x1xi32>
    %99 = vector.broadcast %98 : vector<8x1xi32> to vector<8x512xi32>
    %100 = arith.cmpi eq, %1, %99 : vector<8x512xi32>
    %101 = arith.extui %100 : vector<8x512xi1> to vector<8x512xi32>
    %102 = arith.sitofp %101 : vector<8x512xi32> to vector<8x512xf32>
    %103 = arith.addf %95, %102 : vector<8x512xf32>
    %104 = vector.extract_strided_slice %0 {offsets = [0, 4], sizes = [8, 1], strides = [1, 1]} : vector<8x8xi32> to vector<8x1xi32>
    %c512_i32_16 = arith.constant 512 : i32
    %105 = vector.broadcast %c512_i32_16 : i32 to vector<8x1xi32>
    %106 = arith.subi %104, %105 : vector<8x1xi32>
    %107 = vector.broadcast %106 : vector<8x1xi32> to vector<8x512xi32>
    %108 = arith.cmpi eq, %1, %107 : vector<8x512xi32>
    %109 = arith.extui %108 : vector<8x512xi1> to vector<8x512xi32>
    %110 = arith.sitofp %109 : vector<8x512xi32> to vector<8x512xf32>
    %111 = arith.addf %103, %110 : vector<8x512xf32>
    %112 = vector.extract_strided_slice %0 {offsets = [0, 5], sizes = [8, 1], strides = [1, 1]} : vector<8x8xi32> to vector<8x1xi32>
    %c512_i32_17 = arith.constant 512 : i32
    %113 = vector.broadcast %c512_i32_17 : i32 to vector<8x1xi32>
    %114 = arith.subi %112, %113 : vector<8x1xi32>
    %115 = vector.broadcast %114 : vector<8x1xi32> to vector<8x512xi32>
    %116 = arith.cmpi eq, %1, %115 : vector<8x512xi32>
    %117 = arith.extui %116 : vector<8x512xi1> to vector<8x512xi32>
    %118 = arith.sitofp %117 : vector<8x512xi32> to vector<8x512xf32>
    %119 = arith.addf %111, %118 : vector<8x512xf32>
    %120 = vector.extract_strided_slice %0 {offsets = [0, 6], sizes = [8, 1], strides = [1, 1]} : vector<8x8xi32> to vector<8x1xi32>
    %c512_i32_18 = arith.constant 512 : i32
    %121 = vector.broadcast %c512_i32_18 : i32 to vector<8x1xi32>
    %122 = arith.subi %120, %121 : vector<8x1xi32>
    %123 = vector.broadcast %122 : vector<8x1xi32> to vector<8x512xi32>
    %124 = arith.cmpi eq, %1, %123 : vector<8x512xi32>
    %125 = arith.extui %124 : vector<8x512xi1> to vector<8x512xi32>
    %126 = arith.sitofp %125 : vector<8x512xi32> to vector<8x512xf32>
    %127 = arith.addf %119, %126 : vector<8x512xf32>
    %128 = vector.extract_strided_slice %0 {offsets = [0, 7], sizes = [8, 1], strides = [1, 1]} : vector<8x8xi32> to vector<8x1xi32>
    %c512_i32_19 = arith.constant 512 : i32
    %129 = vector.broadcast %c512_i32_19 : i32 to vector<8x1xi32>
    %130 = arith.subi %128, %129 : vector<8x1xi32>
    %131 = vector.broadcast %130 : vector<8x1xi32> to vector<8x512xi32>
    %132 = arith.cmpi eq, %1, %131 : vector<8x512xi32>
    %133 = arith.extui %132 : vector<8x512xi1> to vector<8x512xi32>
    %134 = arith.sitofp %133 : vector<8x512xi32> to vector<8x512xf32>
    %135 = arith.addf %127, %134 : vector<8x512xf32>
    %c512 = arith.constant 512 : index
    %c0_20 = arith.constant 0 : index
    %136 = vector.load %arg2[%c512, %c0_20] : memref<1024x128xf32, #tpu.memory_space<vmem>>, vector<512x128xf32>
    %cst_21 = arith.constant dense<0.000000e+00> : vector<8x128xf32>
    %137 = tpu.matmul %135, %136, %cst_21 {dimension_numbers = #tpu.dot_dimension_numbers<[1], [0], [0], [1], [0, 0, 1, 1], [], []>} : vector<8x512xf32>, vector<512x128xf32>, vector<8x128xf32> -> vector<8x128xf32>
    %138 = arith.addf %70, %137 : vector<8x128xf32>
    %c1000_i32 = arith.constant 1000 : i32
    %139 = vector.broadcast %c1000_i32 : i32 to vector<8x8xi32>
    %140 = arith.cmpi ne, %0, %139 : vector<8x8xi32>
    %141 = arith.extui %140 : vector<8x8xi1> to vector<8x8xi32>
    %142 = arith.sitofp %141 : vector<8x8xi32> to vector<8x8xf32>
    %cst_22 = arith.constant dense<0.000000e+00> : vector<8xf32>
    %143 = vector.multi_reduction <add>, %142, %cst_22 [1] : vector<8x8xf32> to vector<8xf32>
    %144 = vector.shape_cast %143 : vector<8xf32> to vector<8x1xf32>
    %cst_23 = arith.constant 1.000000e+00 : f32
    %145 = vector.broadcast %cst_23 : f32 to vector<8x1xf32>
    %146 = arith.divf %145, %144 : vector<8x1xf32>
    %147 = vector.broadcast %146 : vector<8x1xf32> to vector<8x128xf32>
    %148 = arith.mulf %138, %147 : vector<8x128xf32>
    %c0_24 = arith.constant 0 : index
    %c0_25 = arith.constant 0 : index
    %149 = vector.load %arg3[%c0_24, %c0_25] : memref<1x128xf32, #tpu.memory_space<vmem>>, vector<1x128xf32>
    %150 = vector.broadcast %149 : vector<1x128xf32> to vector<8x128xf32>
    %151 = arith.addf %148, %150 : vector<8x128xf32>
    %cst_26 = arith.constant 0.000000e+00 : f32
    %152 = vector.broadcast %cst_26 : f32 to vector<8x128xf32>
    %153 = arith.maximumf %151, %152 : vector<8x128xf32>
    %c0_27 = arith.constant 0 : index
    %c0_28 = arith.constant 0 : index
    %154 = vector.load %arg4[%c0_27, %c0_28] : memref<128x128xf32, #tpu.memory_space<vmem>>, vector<128x128xf32>
    %cst_29 = arith.constant dense<0.000000e+00> : vector<8x128xf32>
    %155 = tpu.matmul %153, %154, %cst_29 {dimension_numbers = #tpu.dot_dimension_numbers<[1], [0], [0], [1], [0, 0, 1, 1], [], []>} : vector<8x128xf32>, vector<128x128xf32>, vector<8x128xf32> -> vector<8x128xf32>
    %c0_30 = arith.constant 0 : index
    %c0_31 = arith.constant 0 : index
    %156 = vector.load %arg5[%c0_30, %c0_31] : memref<1x128xf32, #tpu.memory_space<vmem>>, vector<1x128xf32>
    %157 = vector.broadcast %156 : vector<1x128xf32> to vector<8x128xf32>
    %158 = arith.addf %155, %157 : vector<8x128xf32>
    %c0_32 = arith.constant 0 : index
    %c0_33 = arith.constant 0 : index
    %159 = vector.load %arg6[%c0_32, %c0_33] : memref<8x128xf32, #tpu.memory_space<vmem>>, vector<8x128xf32>
    tpu.vector_store %arg6[%c0_32, %c0_33], %158 {strides = array<i32>} : memref<8x128xf32, #tpu.memory_space<vmem>>, vector<8x128xf32>,
    return
  }
  func.func @transform_0(%arg0: i32) -> (i32, i32) {
    %c0_i32 = arith.constant 0 : i32
    %c0_i32_0 = arith.constant 0 : i32
    return %arg0, %c0_i32 : i32, i32
  }
  func.func @transform_1(%arg0: i32) -> (i32, i32) {
    %c0_i32 = arith.constant 0 : i32
    %c0_i32_0 = arith.constant 0 : i32
    %c0_i32_1 = arith.constant 0 : i32
    return %c0_i32, %c0_i32_0 : i32, i32
  }
  func.func @transform_2(%arg0: i32) -> (i32, i32) {
    %c0_i32 = arith.constant 0 : i32
    %c0_i32_0 = arith.constant 0 : i32
    %c0_i32_1 = arith.constant 0 : i32
    return %c0_i32, %c0_i32_0 : i32, i32
  }
  func.func @transform_3(%arg0: i32) -> (i32, i32) {
    %c0_i32 = arith.constant 0 : i32
    %c0_i32_0 = arith.constant 0 : i32
    %c0_i32_1 = arith.constant 0 : i32
    return %c0_i32, %c0_i32_0 : i32, i32
  }
  func.func @transform_4(%arg0: i32) -> (i32, i32) {
    %c0_i32 = arith.constant 0 : i32
    %c0_i32_0 = arith.constant 0 : i32
    %c0_i32_1 = arith.constant 0 : i32
    return %c0_i32, %c0_i32_0 : i32, i32
  }
  func.func @transform_5(%arg0: i32) -> (i32, i32) {
    %c0_i32 = arith.constant 0 : i32
    %c0_i32_0 = arith.constant 0 : i32
    return %arg0, %c0_i32 : i32, i32
  }
}

</mosaic_0001>

<bundles_post_ra>
// kernel: tpu_custom_call.1
= control target key start
LH: loop header
LB: loop body
LE: loop exit
PB: predicated region body
PF: predicated region fallthrough
CT: control target
= control target key end

     0   :  { %10 = vsyncpa [#allocation3], 0  ;;  %s1322_s0 = inlined_call_operand.hbm [shape: s32[8,8], index: 0, kind: input, shape index: {}]   ;;  %s1323_s1 = inlined_call_operand.hbm [shape: f32[1024,128], index: 1, kind: input, shape index: {}]   ;;  %s1324_s2 = inlined_call_operand.vmem [shape: f32[1,128], index: 2, kind: input, shape index: {}]   ;;  %s1325_s3 = inlined_call_operand.hbm [shape: f32[128,128], index: 3, kind: input, shape index: {}]   ;;  %s1326_s4 = inlined_call_operand.vmem [shape: f32[1,128], index: 4, kind: input, shape index: {}]   ;;  %s1327_s5 = inlined_call_operand.hbm [shape: f32[8,128], index: 5, kind: output, shape index: {}]  }
   0x1   :  { %11 = vsyncpa [#allocation6], 0  ;;  %s28_s20 = sshll.u32 %s1323_s1, 4  ;;  %s29_s20 = int_to_ptr.hbm [resolvable:$true] %s28_s20 }
   0x2   :  { %12 = vsyncpa [#allocation4], 0  ;;  %s957_s21 = smov [#allocation5]   ;;  %s18_s25 = sshll.u32 %s1322_s0, 4  ;;  %s19_s25 = int_to_ptr.hbm [resolvable:$true] %s18_s25 }
   0x3   :  { %s30_s22 = sshll.u32 %s957_s21, 4  ;;  %s958_s26 = smov 128   ;;  %s31_s22 = int_to_ptr.vmem [resolvable:$true] %s30_s22 }
   0x4   :  { %s959_s27 = smov 8   ;;  %s960_s28 = smov [#allocation2]  }
   0x5   :  { %36 = dma.hbm_to_vmem [thread:$0]  %s29_s20, 16384, %s31_s22, [#allocation6], %s958_s26, %s958_s26, %s959_s27  }
   0x6   :  { %s20_s29 = sshll.u32 %s960_s28, 4  ;;  %s43_s7 = sshll.u32 %s1325_s3, 4  ;;  %s21_s29 = int_to_ptr.vmem [resolvable:$true] %s20_s29  ;;  %s44_s7 = int_to_ptr.hbm [resolvable:$true] %s43_s7 }
   0x7   :  { %23 = dma.hbm_to_vmem [thread:$0]  %s19_s25, 128, %s21_s29, [#allocation3]  }
   0x8   :  { %s961_s1 = smov [#allocation7]  }
   0x9   :  { %s45_s8 = sshll.u32 %s961_s1, 4  ;;  %s46_s8 = int_to_ptr.vmem [resolvable:$true] %s45_s8 }
   0xa   :  { %51 = dma.hbm_to_vmem [thread:$0]  %s44_s7, 2048, %s46_s8, [#allocation6], %s958_s26, %s958_s26, %s959_s27  }
   0xb   :  { %951 = dma.done.wait [#allocation3], 128  }
   0xc   :  { %952 = vsyncadd [#allocation3], 4294967168 }
   0xd   :  { %953 = dma.done.wait [#allocation6], 18432  }
   0xe   :  { %954 = vsyncadd [#allocation6], 4294948864  ;;  %v962_v0 = vmov 2   ;;  %v963_v1 = vmov 0   ;;  %v1011_v2 = vld [vmem:[#allocation2] sm:$0xff]  ;;  %v964_v4 = vmov 4  }
   0xf   :  { %837 = vset.pattern.permute.xlu1 %v962_v0  ;;  %834 = vset.pattern.permute.xlu0 %v963_v1  ;;  %v785_v3 = vadd.s32 4294966784, %v1011_v2  ;;  %v965_v5 = vmov 3   ;;  %v966_v6 = vmov 1   ;;  %v456_v7 = vld [vmem:[#allocation5 + $0x278] sm:$0xff]  ;;  %v967_v11 = vmov 5   ;;  %v455_v12 = vld [vmem:[#allocation5 + $0x270] sm:$0xff] }
  0x10   :  { %836 = vset.pattern.permute.xlu2 %v963_v1  ;;  %v472_v8 = vld [vmem:[#allocation5 + $0x2f8] sm:$0xff]  ;;  %505 = vmatpush.msra.mxu0 %v456_v7  ;;  %v471_v13 = vld [vmem:[#allocation5 + $0x2f0] sm:$0xff]  ;;  %v968_v16 = vmov 6   ;;  %v969_v17 = vmov 7   ;;  %v454_v18 = vld [vmem:[#allocation5 + $0x268] sm:$0xff]  ;;  %s971_s11 = smov [#allocation8]  }
  0x11   :  { %73 = vperm.xlu2 %836, %v1011_v2   ;;  %328 = vperm.xlu1 %837, %v785_v3   ;;  %v488_v9 = vld [vmem:[#allocation5 + $0x378] sm:$0xff]  ;;  %v487_v14 = vld [vmem:[#allocation5 + $0x370] sm:$0xff]  ;;  %v470_v19 = vld [vmem:[#allocation5 + $0x2e8] sm:$0xff]  ;;  %s740_s12 = sshll.u32 %s971_s11, 4  ;;  %s742_s15 = sshll.u32 %s1327_s5, 4  ;;  %s741_s12 = int_to_ptr.vmem [resolvable:$true] %s740_s12  ;;  %s743_s15 = int_to_ptr.hbm [resolvable:$true] %s742_s15 }
  0x12   :  { %290 = vperm.xlu0 %834, %v785_v3   ;;  %525 = vmatpush.msra.mxu1 %v472_v8  ;;  %v504_v10 = vld [vmem:[#allocation5 + $0x3f8] sm:$0xff]  ;;  %v503_v15 = vld [vmem:[#allocation5 + $0x3f0] sm:$0xff]  ;;  %v486_v20 = vld [vmem:[#allocation5 + $0x368] sm:$0xff] }
  0x13   :  { %545 = vmatpush.msra.mxu2 %v488_v9  ;;  %565 = vmatpush.msra.mxu3 %v504_v10  ;;  %v502_v21 = vld [vmem:[#allocation5 + $0x3e8] sm:$0xff]  ;;  %v453_v22 = vld [vmem:[#allocation5 + $0x260] sm:$0xff]  ;;  %v452_v26 = vld [vmem:[#allocation5 + $0x258] sm:$0xff] }
  0x14   :  { %506 = vmatpush.msra.mxu0 %v455_v12  ;;  %526 = vmatpush.msra.mxu1 %v471_v13  ;;  %v469_v23 = vld [vmem:[#allocation5 + $0x2e0] sm:$0xff]  ;;  %v468_v27 = vld [vmem:[#allocation5 + $0x2d8] sm:$0xff]  ;;  %v451_v30 = vld [vmem:[#allocation5 + $0x250] sm:$0xff]  ;;  %v67_v12 = vlaneseq }
  0x15   :  { %546 = vmatpush.msra.mxu2 %v487_v14  ;;  %566 = vmatpush.msra.mxu3 %v503_v15  ;;  %v485_v24 = vld [vmem:[#allocation5 + $0x360] sm:$0xff]  ;;  %v484_v28 = vld [vmem:[#allocation5 + $0x358] sm:$0xff]  ;;  %v467_v31 = vld [vmem:[#allocation5 + $0x2d0] sm:$0xff] }
  0x16   :  { %507 = vmatpush.msra.mxu0 %v454_v18  ;;  %527 = vmatpush.msra.mxu1 %v470_v19  ;;  %v501_v25 = vld [vmem:[#allocation5 + $0x3e0] sm:$0xff]  ;;  %v500_v29 = vld [vmem:[#allocation5 + $0x3d8] sm:$0xff]  ;;  %v483_v32 = vld [vmem:[#allocation5 + $0x350] sm:$0xff] }
  0x17   :  { %547 = vmatpush.msra.mxu2 %v486_v20  ;;  %567 = vmatpush.msra.mxu3 %v502_v21  ;;  %v499_v33 = vld [vmem:[#allocation5 + $0x3d0] sm:$0xff]  ;;  %v450_v34 = vld [vmem:[#allocation5 + $0x248] sm:$0xff]  ;;  %v449_v38 = vld [vmem:[#allocation5 + $0x240] sm:$0xff] }
  0x18   :  { %508 = vmatpush.msra.mxu0 %v453_v22  ;;  %528 = vmatpush.msra.mxu1 %v469_v23  ;;  %v466_v35 = vld [vmem:[#allocation5 + $0x2c8] sm:$0xff]  ;;  %v465_v39 = vld [vmem:[#allocation5 + $0x2c0] sm:$0xff]  ;;  %v448_v42 = vld [vmem:[#allocation5 + $0x238] sm:$0xff]  ;;  %v1026_v22 = vand.u32 127, %v67_v12 }
  0x19   :  { %840 = vset.pattern.permute.xlu2 %v964_v4  ;;  %838 = vset.pattern.permute.xlu1 %v965_v5  ;;  %v482_v36 = vld [vmem:[#allocation5 + $0x348] sm:$0xff]  ;;  %v481_v40 = vld [vmem:[#allocation5 + $0x340] sm:$0xff]  ;;  %v464_v43 = vld [vmem:[#allocation5 + $0x2b8] sm:$0xff] }
  0x1a   :  { %366 = vperm.xlu2 %840, %v785_v3   ;;  %835 = vset.pattern.permute.xlu0 %v966_v6  ;;  %v498_v37 = vld [vmem:[#allocation5 + $0x3c8] sm:$0xff]  ;;  %v497_v41 = vld [vmem:[#allocation5 + $0x3c0] sm:$0xff]  ;;  %v480_v44 = vld [vmem:[#allocation5 + $0x338] sm:$0xff] }
  0x1b   :  { %347 = vperm.xlu1 %838, %v785_v3   ;;  %309 = vperm.xlu0 %835, %v785_v3   ;;  %v496_v45 = vld [vmem:[#allocation5 + $0x3b8] sm:$0xff]  ;;  %v447_v46 = vld [vmem:[#allocation5 + $0x230] sm:$0xff]  ;;  %v446_v51 = vld [vmem:[#allocation5 + $0x228] sm:$0xff] }
  0x1c   :  { %548 = vmatpush.msra.mxu2 %v485_v24  ;;  %568 = vmatpush.msra.mxu3 %v501_v25  ;;  %v463_v47 = vld [vmem:[#allocation5 + $0x2b0] sm:$0xff]  ;;  %v462_v52 = vld [vmem:[#allocation5 + $0x2a8] sm:$0xff]  ;;  %v445_v55 = vld [vmem:[#allocation5 + $0x220] sm:$0xff] }
  0x1d   :  { %509 = vmatpush.msra.mxu0 %v452_v26  ;;  %529 = vmatpush.msra.mxu1 %v468_v27  ;;  %v479_v48 = vld [vmem:[#allocation5 + $0x330] sm:$0xff]  ;;  %v478_v53 = vld [vmem:[#allocation5 + $0x328] sm:$0xff]  ;;  %v461_v56 = vld [vmem:[#allocation5 + $0x2a0] sm:$0xff] }
  0x1e   :  { %549 = vmatpush.msra.mxu2 %v484_v28  ;;  %569 = vmatpush.msra.mxu3 %v500_v29  ;;  %v495_v49 = vld [vmem:[#allocation5 + $0x3b0] sm:$0xff]  ;;  %v494_v54 = vld [vmem:[#allocation5 + $0x3a8] sm:$0xff]  ;;  %v477_v57 = vld [vmem:[#allocation5 + $0x320] sm:$0xff] }
  0x1f   :  { %510 = vmatpush.msra.mxu0 %v451_v30  ;;  %530 = vmatpush.msra.mxu1 %v467_v31  ;;  %v493_v58 = vld [vmem:[#allocation5 + $0x3a0] sm:$0xff]  ;;  %v444_v59 = vld [vmem:[#allocation5 + $0x218] sm:$0xff]  ;;  %v443_v63 = vld [vmem:[#allocation5 + $0x210] sm:$0xff]  ;;  %v1029_v31 = vadd.s32 128, %v1026_v22 }
  0x20   :  { %550 = vmatpush.msra.mxu2 %v483_v32  ;;  %570 = vmatpush.msra.mxu3 %v499_v33  ;;  %v460_v60 = vld [vmem:[#allocation5 + $0x298] sm:$0xff]  ;;  %v475_v1 = vld [vmem:[#allocation5 + $0x310] sm:$0xff]  ;;  %v490_v7 = vld [vmem:[#allocation5 + $0x388] sm:$0xff] }
  0x21   :  { %511 = vmatpush.msra.mxu0 %v450_v34  ;;  %531 = vmatpush.msra.mxu1 %v466_v35  ;;  %v476_v61 = vld [vmem:[#allocation5 + $0x318] sm:$0xff]  ;;  %v441_v9 = vld [vmem:[#allocation5 + $0x200] sm:$0xff]  ;;  %v238_v18 = vld [vmem:[#allocation5 + $0x70] sm:$0xff]  ;;  %v1034_v34 = vadd.s32 256, %v1026_v22  ;;  %v1037_v35 = vadd.s32 384, %v1026_v22 }
  0x22   :  { %841 = vset.pattern.permute.xlu2 %v967_v11  ;;  %551 = vmatpush.msra.mxu2 %v482_v36  ;;  %v492_v62 = vld [vmem:[#allocation5 + $0x398] sm:$0xff]  ;;  %v457_v10 = vld [vmem:[#allocation5 + $0x280] sm:$0xff]  ;;  %v254_v19 = vld [vmem:[#allocation5 + $0xf0] sm:$0xff] }
  0x23   :  { %385 = vperm.xlu2 %841, %v785_v3   ;;  %839 = vset.pattern.permute.xlu1 %v966_v6  ;;  %v474_v6 = vld [vmem:[#allocation5 + $0x308] sm:$0xff]  ;;  %v489_v13 = vld [vmem:[#allocation5 + $0x380] sm:$0xff]  ;;  %v239_v14 = vld [vmem:[#allocation5 + $0x78] sm:$0xff] }
  0x24   :  { %842 = vset.pattern.permute.xlu0 %v962_v0  ;;  %92 = vperm.xlu1 %839, %v1011_v2   ;;  %v459_v0 = vld [vmem:[#allocation5 + $0x290] sm:$0xff]  ;;  %v255_v15 = vld [vmem:[#allocation5 + $0xf8] sm:$0xff]  ;;  %v237_v23 = vld [vmem:[#allocation5 + $0x68] sm:$0xff] }
  0x25   :  { %111 = vperm.xlu0 %842, %v1011_v2   ;;  %571 = vmatpush.msra.mxu3 %v498_v37  ;;  %v270_v20 = vld [vmem:[#allocation5 + $0x170] sm:$0xff]  ;;  %v253_v24 = vld [vmem:[#allocation5 + $0xe8] sm:$0xff]  ;;  %v236_v27 = vld [vmem:[#allocation5 + $0x60] sm:$0xff] }
  0x26   :  { %512 = vmatpush.msra.mxu0 %v449_v38  ;;  %532 = vmatpush.msra.mxu1 %v465_v39  ;;  %v286_v21 = vld [vmem:[#allocation5 + $0x1f0] sm:$0xff]  ;;  %v269_v25 = vld [vmem:[#allocation5 + $0x168] sm:$0xff]  ;;  %v252_v28 = vld [vmem:[#allocation5 + $0xe0] sm:$0xff] }
  0x27   :  { %552 = vmatpush.msra.mxu2 %v481_v40  ;;  %572 = vmatpush.msra.mxu3 %v497_v41  ;;  %v285_v26 = vld [vmem:[#allocation5 + $0x1e8] sm:$0xff]  ;;  %v268_v29 = vld [vmem:[#allocation5 + $0x160] sm:$0xff]  ;;  %v235_v33 = vld [vmem:[#allocation5 + $0x58] sm:$0xff] }
  0x28   :  { %513 = vmatpush.msra.mxu0 %v448_v42  ;;  %533 = vmatpush.msra.mxu1 %v464_v43  ;;  %v284_v30 = vld [vmem:[#allocation5 + $0x1e0] sm:$0xff]  ;;  %v251_v36 = vld [vmem:[#allocation5 + $0xd8] sm:$0xff]  ;;  %v234_v41 = vld [vmem:[#allocation5 + $0x50] sm:$0xff] }
  0x29   :  { %553 = vmatpush.msra.mxu2 %v480_v44  ;;  %573 = vmatpush.msra.mxu3 %v496_v45  ;;  %v267_v37 = vld [vmem:[#allocation5 + $0x158] sm:$0xff]  ;;  %v250_v42 = vld [vmem:[#allocation5 + $0xd0] sm:$0xff]  ;;  %v970_v44 = vmov 0.0  }
  0x2a   :  { %514 = vmatpush.msra.mxu0 %v447_v46  ;;  %534 = vmatpush.msra.mxu1 %v463_v47  ;;  %v283_v40 = vld [vmem:[#allocation5 + $0x1d8] sm:$0xff]  ;;  %v266_v43 = vld [vmem:[#allocation5 + $0x150] sm:$0xff] }
  0x2b   :  { %844 = vset.pattern.permute.xlu2 %v965_v5  ;;  %554 = vmatpush.msra.mxu2 %v479_v48  ;;  %v458_v5 = vld [vmem:[#allocation5 + $0x288] sm:$0xff]  ;;  %v282_v47 = vld [vmem:[#allocation5 + $0x1d0] sm:$0xff] }
  0x2c   :  { %130 = vperm.xlu2 %844, %v1011_v2   ;;  %843 = vset.pattern.permute.xlu1 %v968_v16  ;;  %v233_v48 = vld [vmem:[#allocation5 + $0x48] sm:$0xff] }
  0x2d   :  { %847 = vset.pattern.permute.xlu0 %v967_v11  ;;  %404 = vperm.xlu1 %843, %v785_v3   ;;  %v473_v11 = vld [vmem:[#allocation5 + $0x300] sm:$0xff] }
  0x2e   :  { %168 = vperm.xlu0 %847, %v1011_v2   ;;  %574 = vmatpush.msra.mxu3 %v495_v49 }
  0x2f   :  { %515 = vmatpush.msra.mxu0 %v446_v51  ;;  %535 = vmatpush.msra.mxu1 %v462_v52  ;;  %v265_v52 = vld [vmem:[#allocation5 + $0x148] sm:$0xff] }
  0x30   :  { %555 = vmatpush.msra.mxu2 %v478_v53  ;;  %575 = vmatpush.msra.mxu3 %v494_v54  ;;  %v281_v53 = vld [vmem:[#allocation5 + $0x1c8] sm:$0xff]  ;;  %v232_v54 = vld [vmem:[#allocation5 + $0x40] sm:$0xff] }
  0x31   :  { %516 = vmatpush.msra.mxu0 %v445_v55  ;;  %536 = vmatpush.msra.mxu1 %v461_v56  ;;  %v248_v56 = vld [vmem:[#allocation5 + $0xc0] sm:$0xff] }
  0x32   :  { %556 = vmatpush.msra.mxu2 %v477_v57  ;;  %576 = vmatpush.msra.mxu3 %v493_v58  ;;  %v264_v57 = vld [vmem:[#allocation5 + $0x140] sm:$0xff] }
  0x33   :  { %517 = vmatpush.msra.mxu0 %v444_v59  ;;  %537 = vmatpush.msra.mxu1 %v460_v60  ;;  %v280_v60 = vld [vmem:[#allocation5 + $0x1c0] sm:$0xff] }
  0x34   :  { %846 = vset.pattern.permute.xlu2 %v964_v4  ;;  %557 = vmatpush.msra.mxu2 %v476_v61  ;;  %v442_v4 = vld [vmem:[#allocation5 + $0x208] sm:$0xff] }
  0x35   :  { %149 = vperm.xlu2 %846, %v1011_v2   ;;  %845 = vset.pattern.permute.xlu1 %v969_v17 }
  0x36   :  { %850 = vset.pattern.permute.xlu0 %v969_v17  ;;  %423 = vperm.xlu1 %845, %v785_v3   ;;  %v491_v3 = vld [vmem:[#allocation5 + $0x390] sm:$0xff] }
  0x37   :  { %577 = vmatpush.msra.mxu3 %v492_v62  ;;  %518 = vmatpush.msra.mxu0 %v443_v63 }
  0x38   :  { %538 = vmatpush.msra.mxu1 %v459_v0  ;;  %558 = vmatpush.msra.mxu2 %v475_v1  ;;  %v231_v0 = vld [vmem:[#allocation5 + $0x38] sm:$0xff] }
  0x39   :  { %578 = vmatpush.msra.mxu3 %v491_v3  ;;  %519 = vmatpush.msra.mxu0 %v442_v4  ;;  %v247_v1 = vld [vmem:[#allocation5 + $0xb8] sm:$0xff] }
  0x3a   :  { %539 = vmatpush.msra.mxu1 %v458_v5  ;;  %559 = vmatpush.msra.mxu2 %v474_v6 }
  0x3b   :  { %579 = vmatpush.msra.mxu3 %v490_v7  ;;  %520 = vmatpush.msra.mxu0 %v441_v9 }
  0x3c   :  { %540 = vmatpush.msra.mxu1 %v457_v10  ;;  %560 = vmatpush.msra.mxu2 %v473_v11  ;;  %v263_v10 = vld [vmem:[#allocation5 + $0x138] sm:$0xff] }
  0x3d   :  { %849 = vset.pattern.permute.xlu2 %v969_v17  ;;  %v287_v17 = vld [vmem:[#allocation5 + $0x1f8] sm:$0xff]  ;;  %580 = vmatpush.msra.mxu3 %v489_v13 }
  0x3e   :  { %206 = vperm.xlu2 %849, %v1011_v2   ;;  %848 = vset.pattern.permute.xlu1 %v968_v16  ;;  %v271_v16 = vld [vmem:[#allocation5 + $0x178] sm:$0xff] }
  0x3f   :  { %187 = vperm.xlu1 %848, %v1011_v2   ;;  %585 = vmatpush.msrb.mxu0 %v239_v14  ;;  %v279_v13 = vld [vmem:[#allocation5 + $0x1b8] sm:$0xff]  ;;  %v230_v14 = vld [vmem:[#allocation5 + $0x30] sm:$0xff] }
  0x40   :  { %605 = vmatpush.msrb.mxu1 %v255_v15  ;;  %625 = vmatpush.msrb.mxu2 %v271_v16  ;;  %v246_v16 = vld [vmem:[#allocation5 + $0xb0] sm:$0xff] }
  0x41   :  { %645 = vmatpush.msrb.mxu3 %v287_v17  ;;  %586 = vmatpush.msrb.mxu0 %v238_v18  ;;  %v262_v17 = vld [vmem:[#allocation5 + $0x130] sm:$0xff] }
  0x42   :  { %606 = vmatpush.msrb.mxu1 %v254_v19  ;;  %626 = vmatpush.msrb.mxu2 %v270_v20 }
  0x43   :  { %646 = vmatpush.msrb.mxu3 %v286_v21  ;;  %587 = vmatpush.msrb.mxu0 %v237_v23  ;;  %v278_v23 = vld [vmem:[#allocation5 + $0x1b0] sm:$0xff] }
  0x44   :  { %607 = vmatpush.msrb.mxu1 %v253_v24  ;;  %627 = vmatpush.msrb.mxu2 %v269_v25 }
  0x45   :  { %647 = vmatpush.msrb.mxu3 %v285_v26  ;;  %588 = vmatpush.msrb.mxu0 %v236_v27 }
  0x46   :  { %608 = vmatpush.msrb.mxu1 %v252_v28  ;;  %628 = vmatpush.msrb.mxu2 %v268_v29  ;;  %v229_v28 = vld [vmem:[#allocation5 + $0x28] sm:$0xff] }
  0x47   :  { %648 = vmatpush.msrb.mxu3 %v284_v30  ;;  %589 = vmatpush.msrb.mxu0 %v235_v33  ;;  %v245_v29 = vld [vmem:[#allocation5 + $0xa8] sm:$0xff] }
  0x48   :  { %609 = vmatpush.msrb.mxu1 %v251_v36  ;;  %629 = vmatpush.msrb.mxu2 %v267_v37  ;;  %v261_v33 = vld [vmem:[#allocation5 + $0x128] sm:$0xff] }
  0x49   :  { %649 = vmatpush.msrb.mxu3 %v283_v40  ;;  %590 = vmatpush.msrb.mxu0 %v234_v41  ;;  %v277_v40 = vld [vmem:[#allocation5 + $0x1a8] sm:$0xff] }
  0x4a   :  { %610 = vmatpush.msrb.mxu1 %v250_v42  ;;  %630 = vmatpush.msrb.mxu2 %v266_v43 }
  0x4b   :  { %650 = vmatpush.msrb.mxu3 %v282_v47  ;;  %591 = vmatpush.msrb.mxu0 %v233_v48  ;;  %v228_v48 = vld [vmem:[#allocation5 + $0x20] sm:$0xff] }
  0x4c   :  { %631 = vmatpush.msrb.mxu2 %v265_v52 }
  0x4d   :  { %651 = vmatpush.msrb.mxu3 %v281_v53  ;;  %592 = vmatpush.msrb.mxu0 %v232_v54 }
  0x4e   :  { %632 = vmatpush.msrb.mxu2 %v264_v57 }
  0x4f   :  { %652 = vmatpush.msrb.mxu3 %v280_v60  ;;  %593 = vmatpush.msrb.mxu0 %v231_v0  ;;  %v260_v60 = vld [vmem:[#allocation5 + $0x120] sm:$0xff] }
  0x50   :  { %633 = vmatpush.msrb.mxu2 %v263_v10  ;;  %v276_v0 = vld [vmem:[#allocation5 + $0x1a0] sm:$0xff] }
  0x51   :  { %653 = vmatpush.msrb.mxu3 %v279_v13  ;;  %594 = vmatpush.msrb.mxu0 %v230_v14  ;;  %v259_v13 = vld [vmem:[#allocation5 + $0x118] sm:$0xff] }
  0x52   :  { %634 = vmatpush.msrb.mxu2 %v262_v17 }
  0x53   :  { %654 = vmatpush.msrb.mxu3 %v278_v23  ;;  %595 = vmatpush.msrb.mxu0 %v229_v28 }
  0x54   :  { %635 = vmatpush.msrb.mxu2 %v261_v33 }
  0x55   :  { %655 = vmatpush.msrb.mxu3 %v277_v40  ;;  %596 = vmatpush.msrb.mxu0 %v228_v48 }
  0x56   :  { %636 = vmatpush.msrb.mxu2 %v260_v60 }
  0x57   :  { %656 = vmatpush.msrb.mxu3 %v276_v0  ;;  %v256_v0 = vld [vmem:[#allocation5 + $0x100] sm:$0xff] }
  0x58   :  { %637 = vmatpush.msrb.mxu2 %v259_v13 }
  0x6b   :  { %v1022_v50 = vpop.permute.xlu2 %73 }
  0x6c   :  { %vm75_vm0 = vcmp.eq.s32.totalorder %v1026_v22, %v1022_v50  ;;  %vm76_vm1 = vcmp.eq.s32.totalorder %v1029_v31, %v1022_v50  ;;  %vm77_vm2 = vcmp.eq.s32.totalorder %v1034_v34, %v1022_v50  ;;  %vm78_vm3 = vcmp.eq.s32.totalorder %v1037_v35, %v1022_v50  ;;  %v249_v50 = vld [vmem:[#allocation5 + $0xc8] sm:$0xff] }
  0x6d   :  { %v1053_v45 = vsel %vm75_vm0, 1.0, %v970_v44  ;;  %v1059_v46 = vsel %vm76_vm1, 1.0, %v970_v44  ;;  %v1064_v49 = vsel %vm77_vm2, 1.0, %v970_v44  ;;  %v1067_v51 = vsel %vm78_vm3, 1.0, %v970_v44  ;;  %611 = vmatpush.msrb.mxu1 %v249_v50  ;;  %v244_v50 = vld [vmem:[#allocation5 + $0xa0] sm:$0xff] }
  0x6f   :  { %612 = vmatpush.msrb.mxu1 %v248_v56 }
  0x71   :  { %613 = vmatpush.msrb.mxu1 %v247_v1 }
  0x73   :  { %614 = vmatpush.msrb.mxu1 %v246_v16  ;;  %v226_v16 = vld [vmem:[#allocation5 + $0x10] sm:$0xff] }
  0x74   :  { %v1024_v8 = vpop.permute.xlu2 %366 }
  0x75   :  { %vm368_vm4 = vcmp.eq.s32.totalorder %v1026_v22, %v1024_v8  ;;  %vm369_vm5 = vcmp.eq.s32.totalorder %v1029_v31, %v1024_v8  ;;  %vm370_vm6 = vcmp.eq.s32.totalorder %v1034_v34, %v1024_v8  ;;  %vm371_vm7 = vcmp.eq.s32.totalorder %v1037_v35, %v1024_v8  ;;  %615 = vmatpush.msrb.mxu1 %v245_v29 }
  0x76   :  { %v1083_v55 = vsel %vm368_vm4, 1.0, %v970_v44  ;;  %v1093_v58 = vsel %vm369_vm5, 1.0, %v970_v44  ;;  %v1099_v59 = vsel %vm370_vm6, 1.0, %v970_v44  ;;  %v1109_v61 = vsel %vm371_vm7, 1.0, %v970_v44 }
  0x77   :  { %616 = vmatpush.msrb.mxu1 %v244_v50 }
  0x7d   :  { %v1031_v32 = vpop.permute.xlu2 %385 }
  0x7e   :  { %vm387_vm10 = vcmp.eq.s32.totalorder %v1026_v22, %v1031_v32 }
  0x7f   :  { %v1122_v3 = vsel %vm387_vm10, 1.0, %v970_v44 }
  0x83   :  { %v329_v38 = vpop.permute.xlu1 %328 }
  0x84   :  { %v1043_v39 = vpop.permute.xlu0 %290  ;;  %vm330_vm8 = vcmp.eq.s32.totalorder %v1026_v22, %v329_v38  ;;  %vm331_vm9 = vcmp.eq.s32.totalorder %v1029_v31, %v329_v38  ;;  %vm332_vm11 = vcmp.eq.s32.totalorder %v1034_v34, %v329_v38  ;;  %vm333_vm12 = vcmp.eq.s32.totalorder %v1037_v35, %v329_v38 }
  0x85   :  { %vm292_vm13 = vcmp.eq.s32.totalorder %v1026_v22, %v1043_v39  ;;  %vm293_vm14 = vcmp.eq.s32.totalorder %v1029_v31, %v1043_v39  ;;  %vm294_vm15 = vcmp.eq.s32.totalorder %v1034_v34, %v1043_v39  ;;  %v794_v62 = vsel %vm330_vm8, 1.0, %v970_v44 }
  0x86   :  { %vm295_vm0 = vcmp.eq.s32.totalorder %v1037_v35, %v1043_v39  ;;  %v1116_v63 = vpop.permute.xlu2 %130  ;;  %v795_v4 = vsel %vm331_vm9, 1.0, %v970_v44  ;;  %v796_v5 = vsel %vm332_vm11, 1.0, %v970_v44  ;;  %v797_v6 = vsel %vm333_vm12, 1.0, %v970_v44 }
  0x87   :  { %v786_v7 = vsel %vm292_vm13, 1.0, %v970_v44  ;;  %v787_v11 = vsel %vm293_vm14, 1.0, %v970_v44  ;;  %v788_v12 = vsel %vm294_vm15, 1.0, %v970_v44  ;;  %vm132_vm2 = vcmp.eq.s32.totalorder %v1026_v22, %v1116_v63 }
  0x88   :  { %v789_v15 = vsel %vm295_vm0, 1.0, %v970_v44  ;;  %vm133_vm10 = vcmp.eq.s32.totalorder %v1029_v31, %v1116_v63  ;;  %vm134_vm11 = vcmp.eq.s32.totalorder %v1034_v34, %v1116_v63  ;;  %vm135_vm12 = vcmp.eq.s32.totalorder %v1037_v35, %v1116_v63  ;;  %v274_v63 = vld [vmem:[#allocation5 + $0x190] sm:$0xff] }
  0x89   :  { %v1173_v30 = vsel %vm132_vm2, 1.0, %v970_v44  ;;  %vm388_vm13 = vcmp.eq.s32.totalorder %v1029_v31, %v1031_v32  ;;  %vm389_vm14 = vcmp.eq.s32.totalorder %v1034_v34, %v1031_v32  ;;  %vm390_vm15 = vcmp.eq.s32.totalorder %v1037_v35, %v1031_v32 }
  0x8a   :  { %v766_v17 = vsel %vm133_vm10, 1.0, %v970_v44 }
  0x8d   :  { %v348_v8 = vpop.permute.xlu1 %347  ;;  %v310_v9 = vpop.permute.xlu0 %309 }
  0x8e   :  { %vm349_vm1 = vcmp.eq.s32.totalorder %v1026_v22, %v348_v8  ;;  %vm350_vm3 = vcmp.eq.s32.totalorder %v1029_v31, %v348_v8  ;;  %vm351_vm4 = vcmp.eq.s32.totalorder %v1034_v34, %v348_v8  ;;  %vm352_vm5 = vcmp.eq.s32.totalorder %v1037_v35, %v348_v8  ;;  %v243_v8 = vld [vmem:[#allocation5 + $0x98] sm:$0xff] }
  0x8f   :  { %vm311_vm6 = vcmp.eq.s32.totalorder %v1026_v22, %v310_v9  ;;  %vm312_vm7 = vcmp.eq.s32.totalorder %v1029_v31, %v310_v9  ;;  %vm313_vm8 = vcmp.eq.s32.totalorder %v1034_v34, %v310_v9  ;;  %vm314_vm9 = vcmp.eq.s32.totalorder %v1037_v35, %v310_v9  ;;  %v150_v14 = vpop.permute.xlu2 %149  ;;  %617 = vmatpush.msrb.mxu1 %v243_v8 }
  0x90   :  { %v790_v18 = vsel %vm311_vm6, 1.0, %v970_v44  ;;  %v791_v19 = vsel %vm312_vm7, 1.0, %v970_v44  ;;  %v792_v20 = vsel %vm313_vm8, 1.0, %v970_v44  ;;  %v793_v21 = vsel %vm314_vm9, 1.0, %v970_v44 }
  0x91   :  { %v323_v24 = vadd.f32 %v790_v18, %v786_v7  ;;  %v324_v25 = vadd.f32 %v791_v19, %v787_v11  ;;  %v325_v26 = vadd.f32 %v792_v20, %v788_v12  ;;  %v326_v27 = vadd.f32 %v793_v21, %v789_v15  ;;  %v227_v7 = vld [vmem:[#allocation5 + $0x18] sm:$0xff]  ;;  %v242_v21 = vld [vmem:[#allocation5 + $0x90] sm:$0xff] }
  0x92   :  { %v798_v41 = vsel %vm349_vm1, 1.0, %v970_v44  ;;  %v799_v42 = vsel %vm350_vm3, 1.0, %v970_v44  ;;  %v800_v43 = vsel %vm351_vm4, 1.0, %v970_v44  ;;  %v801_v47 = vsel %vm352_vm5, 1.0, %v970_v44  ;;  %v275_v15 = vld [vmem:[#allocation5 + $0x198] sm:$0xff]  ;;  %597 = vmatpush.msrb.mxu0 %v227_v7  ;;  %618 = vmatpush.msrb.mxu1 %v242_v21 }
  0x93   :  { %v342_v36 = vadd.f32 %v794_v62, %v323_v24  ;;  %v343_v37 = vadd.f32 %v795_v4, %v324_v25  ;;  %v344_v38 = vadd.f32 %v796_v5, %v325_v26  ;;  %v345_v39 = vadd.f32 %v797_v6, %v326_v27  ;;  %657 = vmatpush.msrb.mxu3 %v275_v15  ;;  %v258_v24 = vld [vmem:[#allocation5 + $0x110] sm:$0xff] }
  0x94   :  { %v767_v18 = vsel %vm134_vm11, 1.0, %v970_v44  ;;  %v768_v19 = vsel %vm135_vm12, 1.0, %v970_v44  ;;  %vm151_vm8 = vcmp.eq.s32.totalorder %v1026_v22, %v150_v14  ;;  %vm152_vm9 = vcmp.eq.s32.totalorder %v1029_v31, %v150_v14  ;;  %598 = vmatpush.msrb.mxu0 %v226_v16  ;;  %638 = vmatpush.msrb.mxu2 %v258_v24 }
  0x95   :  { %v361_v53 = vadd.f32 %v798_v41, %v342_v36  ;;  %v362_v54 = vadd.f32 %v799_v42, %v343_v37  ;;  %v363_v56 = vadd.f32 %v800_v43, %v344_v38  ;;  %v364_v57 = vadd.f32 %v801_v47, %v345_v39  ;;  %v225_v38 = vld [vmem:[#allocation5 + $0x8] sm:$0xff]  ;;  %658 = vmatpush.msrb.mxu3 %v274_v63 }
  0x96   :  { %v93_v52 = vpop.permute.xlu1 %92  ;;  %vm153_vm10 = vcmp.eq.s32.totalorder %v1034_v34, %v150_v14  ;;  %vm154_vm11 = vcmp.eq.s32.totalorder %v1037_v35, %v150_v14  ;;  %v241_v39 = vld [vmem:[#allocation5 + $0x88] sm:$0xff]  ;;  %v769_v40 = vsel %vm151_vm8, 1.0, %v970_v44  ;;  %599 = vmatpush.msrb.mxu0 %v225_v38 }
  0x97   :  { %vm94_vm0 = vcmp.eq.s32.totalorder %v1026_v22, %v93_v52  ;;  %vm95_vm1 = vcmp.eq.s32.totalorder %v1029_v31, %v93_v52  ;;  %vm96_vm2 = vcmp.eq.s32.totalorder %v1034_v34, %v93_v52  ;;  %vm97_vm3 = vcmp.eq.s32.totalorder %v1037_v35, %v93_v52  ;;  %v112_v62 = vpop.permute.xlu0 %111  ;;  %v273_v43 = vld [vmem:[#allocation5 + $0x188] sm:$0xff]  ;;  %619 = vmatpush.msrb.mxu1 %v241_v39  ;;  %v224_v52 = vld [vmem:[#allocation5] sm:$0xff] }
  0x98   :  { %v757_v1 = vsel %vm94_vm0, 1.0, %v970_v44  ;;  %v758_v4 = vsel %vm95_vm1, 1.0, %v970_v44  ;;  %v759_v5 = vsel %vm96_vm2, 1.0, %v970_v44  ;;  %v760_v6 = vsel %vm97_vm3, 1.0, %v970_v44  ;;  %659 = vmatpush.msrb.mxu3 %v273_v43  ;;  %600 = vmatpush.msrb.mxu0 %v224_v52  ;;  %v702_v52 = vld [vmem:[#allocation7 + $0x40] sm:$0xff] }
  0x99   :  { %v106_v9 = vadd.f32 %v757_v1, %v1053_v45  ;;  %v107_v10 = vadd.f32 %v758_v4, %v1059_v46  ;;  %v108_v11 = vadd.f32 %v759_v5, %v1064_v49  ;;  %v109_v12 = vadd.f32 %v760_v6, %v1067_v51 }
  0x9a   :  { %vm113_vm4 = vcmp.eq.s32.totalorder %v1026_v22, %v112_v62  ;;  %vm114_vm5 = vcmp.eq.s32.totalorder %v1029_v31, %v112_v62  ;;  %vm115_vm6 = vcmp.eq.s32.totalorder %v1034_v34, %v112_v62  ;;  %vm116_vm7 = vcmp.eq.s32.totalorder %v1037_v35, %v112_v62 }
  0x9b   :  { %v761_v45 = vsel %vm113_vm4, 1.0, %v970_v44  ;;  %v762_v46 = vsel %vm114_vm5, 1.0, %v970_v44  ;;  %v763_v49 = vsel %vm115_vm6, 1.0, %v970_v44  ;;  %v764_v51 = vsel %vm116_vm7, 1.0, %v970_v44 }
  0x9c   :  { %v125_v20 = vadd.f32 %v761_v45, %v106_v9  ;;  %v126_v23 = vadd.f32 %v762_v46, %v107_v10  ;;  %v127_v25 = vadd.f32 %v763_v49, %v108_v11  ;;  %v128_v26 = vadd.f32 %v764_v51, %v109_v12  ;;  %v207_v46 = vpop.permute.xlu2 %206 }
  0x9d   :  { %v380_v27 = vadd.f32 %v1083_v55, %v361_v53  ;;  %v381_v33 = vadd.f32 %v1093_v58, %v362_v54  ;;  %v382_v36 = vadd.f32 %v1099_v59, %v363_v56  ;;  %v383_v37 = vadd.f32 %v1109_v61, %v364_v57  ;;  %v257_v61 = vld [vmem:[#allocation5 + $0x108] sm:$0xff]  ;;  %v240_v53 = vld [vmem:[#allocation5 + $0x80] sm:$0xff] }
  0x9e   :  { %v144_v29 = vadd.f32 %v1173_v30, %v125_v20  ;;  %v807_v55 = vsel %vm388_vm13, 1.0, %v970_v44  ;;  %v808_v58 = vsel %vm389_vm14, 1.0, %v970_v44  ;;  %v809_v59 = vsel %vm390_vm15, 1.0, %v970_v44  ;;  %639 = vmatpush.msrb.mxu2 %v257_v61  ;;  %620 = vmatpush.msrb.mxu1 %v240_v53  ;;  %v701_v53 = vld [vmem:[#allocation7 + $0x38] sm:$0xff] }
  0x9f   :  { %v405_v28 = vpop.permute.xlu1 %404  ;;  %v770_v30 = vsel %vm152_vm9, 1.0, %v970_v44  ;;  %v771_v41 = vsel %vm153_vm10, 1.0, %v970_v44  ;;  %v145_v42 = vadd.f32 %v766_v17, %v126_v23  ;;  %v772_v47 = vsel %vm154_vm11, 1.0, %v970_v44 }
  0xa0   :  { %v146_v48 = vadd.f32 %v767_v18, %v127_v25  ;;  %v147_v32 = vadd.f32 %v768_v19, %v128_v26  ;;  %v399_v50 = vadd.f32 %v1122_v3, %v380_v27  ;;  %v1259_v54 = vadd.f32 %v769_v40, %v144_v29  ;;  %v169_v56 = vpop.permute.xlu0 %168  ;;  %v272_v3 = vld [vmem:[#allocation5 + $0x180] sm:$0xff]  ;;  %640 = vmatpush.msrb.mxu2 %v256_v0  ;;  %v696_v0 = vld [vmem:[#allocation7 + $0x10] sm:$0xff] }
  0xa1   :  { %v400_v57 = vadd.f32 %v807_v55, %v381_v33  ;;  %v401_v60 = vadd.f32 %v808_v58, %v382_v36  ;;  %v402_v62 = vadd.f32 %v809_v59, %v383_v37  ;;  %vm406_vm12 = vcmp.eq.s32.totalorder %v1026_v22, %v405_v28  ;;  %660 = vmatpush.msrb.mxu3 %v272_v3  ;;  %v695_v3 = vld [vmem:[#allocation7 + $0x8] sm:$0xff] }
  0xa2   :  { %vm407_vm13 = vcmp.eq.s32.totalorder %v1029_v31, %v405_v28  ;;  %vm408_vm14 = vcmp.eq.s32.totalorder %v1034_v34, %v405_v28  ;;  %vm409_vm15 = vcmp.eq.s32.totalorder %v1037_v35, %v405_v28  ;;  %v810_v1 = vsel %vm406_vm12, 1.0, %v970_v44 }
  0xa3   :  { %v811_v4 = vsel %vm407_vm13, 1.0, %v970_v44  ;;  %v812_v5 = vsel %vm408_vm14, 1.0, %v970_v44  ;;  %v813_v6 = vsel %vm409_vm15, 1.0, %v970_v44  ;;  %v164_v7 = vadd.f32 %v770_v30, %v145_v42 }
  0xa4   :  { %vm170_vm0 = vcmp.eq.s32.totalorder %v1026_v22, %v169_v56  ;;  %vm171_vm1 = vcmp.eq.s32.totalorder %v1029_v31, %v169_v56  ;;  %vm172_vm2 = vcmp.eq.s32.totalorder %v1034_v34, %v169_v56  ;;  %vm173_vm3 = vcmp.eq.s32.totalorder %v1037_v35, %v169_v56  ;;  %v699_v56 = vld [vmem:[#allocation7 + $0x28] sm:$0xff] }
  0xa5   :  { %v418_v8 = vadd.f32 %v810_v1, %v399_v50  ;;  %v419_v9 = vadd.f32 %v811_v4, %v400_v57  ;;  %vm665_vm4 = vcmp.ne.s32.totalorder %v1011_v2, 1000  ;;  %v420_v11 = vadd.f32 %v812_v5, %v401_v60  ;;  %v703_v50 = vld [vmem:[#allocation7 + $0x48] sm:$0xff]  ;;  %v698_v60 = vld [vmem:[#allocation7 + $0x20] sm:$0xff] }
  0xa6   :  { %v421_v12 = vadd.f32 %v813_v6, %v402_v62  ;;  %v818_v13 = vsel %vm665_vm4, 1.0, %v970_v44  ;;  %vm668_vm5 = vcmask 64512   ;;  %v165_v18 = vadd.f32 %v771_v41, %v146_v48  ;;  %v706_v48 = vld [vmem:[#allocation7 + $0x60] sm:$0xff]  ;;  %v697_v62 = vld [vmem:[#allocation7 + $0x18] sm:$0xff] }
  0xa7   :  { %v166_v19 = vadd.f32 %v772_v47, %v147_v32  ;;  %v773_v20 = vsel %vm170_vm0, 1.0, %v970_v44  ;;  %v669_v21 = vsel %vm668_vm5, %v818_v13, 0.0  ;;  %v774_v23 = vsel %vm171_vm1, 1.0, %v970_v44  ;;  %v707_v47 = vld [vmem:[#allocation7 + $0x68] sm:$0xff]  ;;  %v704_v32 = vld [vmem:[#allocation7 + $0x50] sm:$0xff]  ;;  %v694_v1 = vld [vmem:[#allocation7] sm:$0xff] }
  0xa8   :  { %v424_v10 = vpop.permute.xlu1 %423  ;;  %v775_v24 = vsel %vm172_vm2, 1.0, %v970_v44  ;;  %v776_v25 = vsel %vm173_vm3, 1.0, %v970_v44  ;;  %vm208_vm10 = vcmp.eq.s32.totalorder %v1026_v22, %v207_v46  ;;  %vm209_vm11 = vcmp.eq.s32.totalorder %v1029_v31, %v207_v46  ;;  %670 = vadd.xlane.f32.xlu1 %v669_v21 }
  0xa9   :  { %vm425_vm6 = vcmp.eq.s32.totalorder %v1026_v22, %v424_v10  ;;  %vm426_vm7 = vcmp.eq.s32.totalorder %v1029_v31, %v424_v10  ;;  %vm427_vm8 = vcmp.eq.s32.totalorder %v1034_v34, %v424_v10  ;;  %vm428_vm9 = vcmp.eq.s32.totalorder %v1037_v35, %v424_v10 }
  0xaa   :  { %v814_v14 = vsel %vm425_vm6, 1.0, %v970_v44  ;;  %v815_v15 = vsel %vm426_vm7, 1.0, %v970_v44  ;;  %v816_v2 = vsel %vm427_vm8, 1.0, %v970_v44  ;;  %v817_v45 = vsel %vm428_vm9, 1.0, %v970_v44 }
  0xab   :  { %v437_v49 = vadd.f32 %v814_v14, %v418_v8  ;;  %v438_v51 = vadd.f32 %v815_v15, %v419_v9  ;;  %v439_v16 = vadd.f32 %v816_v2, %v420_v11  ;;  %v440_v17 = vadd.f32 %v817_v45, %v421_v12 }
  0xac   :  { %vm210_vm12 = vcmp.eq.s32.totalorder %v1034_v34, %v207_v46  ;;  %vm211_vm13 = vcmp.eq.s32.totalorder %v1037_v35, %v207_v46  ;;  %v182_v26 = vadd.f32 %v773_v20, %v1259_v54  ;;  %v183_v27 = vadd.f32 %v774_v23, %v164_v7  ;;  %v700_v54 = vld [vmem:[#allocation7 + $0x30] sm:$0xff] }
  0xad   :  { %521 = vmatmul.f32.vlgmr.msra.gmra.mxu0 %v437_v49  ;;  %541 = vmatmul.f32.vlgmr.msra.gmra.mxu1 %v438_v51  ;;  %v184_v63 = vadd.f32 %v775_v24, %v165_v18  ;;  %v185_v28 = vadd.f32 %v776_v25, %v166_v19  ;;  %v781_v33 = vsel %vm208_vm10, 1.0, %v970_v44  ;;  %v782_v36 = vsel %vm209_vm11, 1.0, %v970_v44  ;;  %v851_v24 = vld [vmem:[%s1324_s2] ss:$0 sm:$0xff] }
  0xae   :  { %561 = vmatmul.f32.vlgmr.msra.gmra.mxu2 %v439_v16  ;;  %581 = vmatmul.f32.vlgmr.msra.gmra.mxu3 %v440_v17  ;;  %v783_v37 = vsel %vm210_vm12, 1.0, %v970_v44  ;;  %v784_v38 = vsel %vm211_vm13, 1.0, %v970_v44 }
  0xb1   :  { %v188_v29 = vpop.permute.xlu1 %187 }
  0xb2   :  { %vm189_vm14 = vcmp.eq.s32.totalorder %v1026_v22, %v188_v29  ;;  %vm190_vm15 = vcmp.eq.s32.totalorder %v1029_v31, %v188_v29  ;;  %vm191_vm0 = vcmp.eq.s32.totalorder %v1034_v34, %v188_v29  ;;  %vm192_vm1 = vcmp.eq.s32.totalorder %v1037_v35, %v188_v29  ;;  %v709_v34 = vld [vmem:[#allocation7 + $0x78] sm:$0xff]  ;;  %v708_v35 = vld [vmem:[#allocation7 + $0x70] sm:$0xff] }
  0xb3   :  { %v777_v39 = vsel %vm189_vm14, 1.0, %v970_v44  ;;  %v778_v40 = vsel %vm190_vm15, 1.0, %v970_v44  ;;  %v779_v55 = vsel %vm191_vm0, 1.0, %v970_v44  ;;  %v780_v58 = vsel %vm192_vm1, 1.0, %v970_v44  ;;  %714 = vmatpush.msra.mxu0 %v709_v34  ;;  %v705_v44 = vld [vmem:[#allocation7 + $0x58] sm:$0xff] }
  0xb4   :  { %v201_v59 = vadd.f32 %v777_v39, %v182_v26  ;;  %v202_v61 = vadd.f32 %v778_v40, %v183_v27  ;;  %v203_v30 = vadd.f32 %v779_v55, %v184_v63  ;;  %v204_v41 = vadd.f32 %v780_v58, %v185_v28  ;;  %v852_v28 = vld [vmem:[%s1326_s4] ss:$0 sm:$0xff] }
  0xb5   :  { %715 = vmatpush.msra.mxu0 %v708_v35 }
  0xb6   :  { %v220_v42 = vadd.f32 %v781_v33, %v201_v59  ;;  %v221_v22 = vadd.f32 %v782_v36, %v202_v61  ;;  %v222_v43 = vadd.f32 %v783_v37, %v203_v30  ;;  %v223_v31 = vadd.f32 %v784_v38, %v204_v41 }
  0xb7   :  { %716 = vmatpush.msra.mxu0 %v707_v47 }
  0xb8   :  { %601 = vmatmul.f32.vlgmr.msrb.gmra.mxu0 %v220_v42  ;;  %621 = vmatmul.f32.vlgmr.msrb.gmra.mxu1 %v221_v22 }
  0xb9   :  { %641 = vmatmul.f32.vlgmr.msrb.gmra.mxu2 %v222_v43  ;;  %661 = vmatmul.f32.vlgmr.msrb.gmra.mxu3 %v223_v31 }
  0xba   :  { %717 = vmatpush.msra.mxu0 %v706_v48 }
  0xbc   :  { %718 = vmatpush.msra.mxu0 %v705_v44 }
  0xbe   :  { %719 = vmatpush.msra.mxu0 %v704_v32 }
  0xc0   :  { %720 = vmatpush.msra.mxu0 %v703_v50 }
  0xc2   :  { %721 = vmatpush.msra.mxu0 %v702_v52 }
  0xc4   :  { %722 = vmatpush.msra.mxu0 %v701_v53 }
  0xc6   :  { %723 = vmatpush.msra.mxu0 %v700_v54 }
  0xc8   :  { %724 = vmatpush.msra.mxu0 %v699_v56 }
  0xca   :  { %725 = vmatpush.msra.mxu0 %v698_v60 }
  0xcc   :  { %726 = vmatpush.msra.mxu0 %v697_v62 }
  0xce   :  { %727 = vmatpush.msra.mxu0 %v696_v0 }
  0xd0   :  { %728 = vmatpush.msra.mxu0 %v695_v3 }
  0xd2   :  { %729 = vmatpush.msra.mxu0 %v694_v1 }
 0x11b   :  { %v671_v57 = vpop.xlane.xlu1 %670 }
 0x11c   :  { %853 = vrcp.f32 %v671_v57  ;;  %vm677_vm2 = vweird.f32 %v671_v57  ;;  %v683_v45 = vand.u32 2147483648, %v671_v57  ;;  %v681_v46 = vand.u32 2147483647, %v671_v57 }
 0x11e   :  { %v684_v17 = vor.u32 1.1754944e-38, %v683_v45  ;;  %vm682_vm5 = vcmp.eq.f32.partialorder %v681_v46, 8.507059e+37 }
 0x122   :  { %v854_v4 = vpop.eup %853 }
 0x123   :  { %v673_v5 = vmul.f32 %v854_v4, %v671_v57  ;;  %vm678_vm3 = vweird.f32 %v854_v4 }
 0x124   :  { %vm679_vm4 = vmor %vm677_vm2, %vm678_vm3 }
 0x125   :  { %v674_v9 = vsub.f32 1.0, %v673_v5 }
 0x127   :  { %v675_v14 = vmul.f32 %v854_v4, %v674_v9 }
 0x129   :  { %v676_v49 = vadd.f32 %v854_v4, %v675_v14 }
 0x12a   :  { %v522_v6 = vpop.f32.mrf.mxu0  ;;  %v542_v7 = vpop.f32.mrf.mxu1 }
 0x12b   :  { %v543_v8 = vadd.f32 %v542_v7, %v522_v6  ;;  %v680_v20 = vsel %vm679_vm4, %v854_v4, %v676_v49 }
 0x12c   :  { %v685_v25 = vsel %vm682_vm5, %v684_v17, %v680_v20 }
 0x131   :  { %v562_v10 = vpop.f32.mrf.mxu2  ;;  %v582_v12 = vpop.f32.mrf.mxu3 }
 0x132   :  { %v563_v11 = vadd.f32 %v562_v10, %v543_v8 }
 0x134   :  { %v583_v13 = vadd.f32 %v582_v12, %v563_v11 }
 0x135   :  { %v602_v15 = vpop.f32.mrf.mxu0  ;;  %v622_v51 = vpop.f32.mrf.mxu1 }
 0x136   :  { %v603_v2 = vadd.f32 %v602_v15, %v583_v13 }
 0x138   :  { %v623_v16 = vadd.f32 %v622_v51, %v603_v2 }
 0x13c   :  { %v642_v18 = vpop.f32.mrf.mxu2  ;;  %v662_v21 = vpop.f32.mrf.mxu3 }
 0x13d   :  { %v643_v19 = vadd.f32 %v642_v18, %v623_v16 }
 0x13f   :  { %v663_v23 = vadd.f32 %v662_v21, %v643_v19 }
 0x141   :  { %v687_v26 = vmul.f32 %v685_v25, %v663_v23 }
 0x143   :  { %v692_v27 = vadd.f32 %v851_v24, %v687_v26 }
 0x145   :  { %v693_v63 = vmax.f32 %v692_v27, 0.0 }
 0x147   :  { %730 = vmatmul.f32.vlgmr.msra.gmra.mxu0 %v693_v63 }
 0x1c4   :  { %v731_v29 = vpop.f32.mrf.mxu0 }
 0x1c5   :  { %v732_v33 = vadd.f32 %v852_v28, %v731_v29 }
 0x1c7   :  { %734 = vst [vmem:[#allocation8] sm:$0xff] %v732_v33 }
 0x1c8   :  { %745 = dma.vmem_to_hbm [thread:$0]  %s741_s12, 128, %s743_s15, [#allocation4]  }
 0x1c9   :  { %955 = dma.done.wait [#allocation4], 128  }
 0x1ca   :  { %956 = vsyncadd [#allocation4], 4294967168 }
 0x1cb   :  { %750 = vsyncpa [#allocation3], 1 }
 0x1cc   :  { %751 = vsyncpa [#allocation6], 1 }
 0x1cd   :  { %752 = vsyncpa [#allocation4], 1 }

</bundles_post_ra>
